<compile_context>
chip_gen: v7x
topology: tpu7x:2x2x1
jax: 0.10.0
libtpu: 0.0.40
codegen_flags: <defaults>
</compile_context>

<pallas_src>
import math

import jax
import jax.numpy as jnp
from jax import lax
from jax.experimental import pallas as pl
from jax.experimental.pallas import tpu as pltpu

LANE = 128


def attention_kernel(x_ref, wqkv_ref, bqkv_ref, o_ref):
    # x_ref    : (Bb, T, C_pad)      bf16 activations (feature dim zero-padded)
    # wqkv_ref : (C_pad, 3*C_pad)    bf16 fused, pre-transposed [Wq/sqrt(C) | Wk | Wv]
    # bqkv_ref : (1, 3*C_pad)        f32 fused bias (bq pre-scaled by 1/sqrt(C))
    # o_ref    : (Bb, T, C_pad)      f32 output (padding columns are zero)
    Bb, T, Cp = x_ref.shape

    # Single fused QKV projection on the MXU, all Bb*T rows at once.
    x2 = x_ref[...].reshape(Bb * T, Cp)                               # bf16, tile-aligned
    qkv = jnp.dot(x2, wqkv_ref[...],
                  preferred_element_type=jnp.float32) + bqkv_ref[...]  # (Bb*T, 3*Cp) f32

    # Tile-aligned slices (lane offsets 0 / Cp / 2*Cp) -> free views.
    q = qkv[:, 0 * Cp:1 * Cp].reshape(Bb, T, Cp).astype(jnp.bfloat16)
    k = qkv[:, 1 * Cp:2 * Cp].reshape(Bb, T, Cp).astype(jnp.bfloat16)
    v = qkv[:, 2 * Cp:3 * Cp].reshape(Bb, T, Cp).astype(jnp.bfloat16)

    # scores = Q @ K^T: contract the feature dim of both operands directly.
    # Zero-padded feature columns contribute nothing.
    s = jnp.einsum("bqd,bkd->bqk", q, k,
                   preferred_element_type=jnp.float32)                # (Bb, T, T) f32

    # In-kernel causal mask (finite large-negative; diagonal is always unmasked,
    # so no row is ever fully masked).
    row = lax.broadcasted_iota(jnp.int32, (T, T), 0)
    col = lax.broadcasted_iota(jnp.int32, (T, T), 1)
    s = jnp.where((col <= row)[None, :, :], s, jnp.float32(-1e30))

    # Numerically stable softmax in f32; EUP approx reciprocal instead of divide.
    s = s - jnp.max(s, axis=-1, keepdims=True)
    e = jnp.exp(s)
    p = e * pl.reciprocal(jnp.sum(e, axis=-1, keepdims=True), approx=True)

    out = jnp.einsum("bqk,bkd->bqd", p.astype(jnp.bfloat16), v,
                     preferred_element_type=jnp.float32)              # (Bb, T, Cp) f32
    o_ref[...] = out.astype(o_ref.dtype)                              # lane-dense store


def attention_pallas(x, wq, bq, wk, bk, wv, bv, *, batch_block=None):
    """Causal self-attention matching the PyTorch Attention.forward.

    x: (B, T, C) f32.  w*: (C, C) PyTorch-style (out, in).  b*: (C,).
    Returns (B, T, C) f32.
    """
    B, T, C = x.shape
    scale = 1.0 / math.sqrt(C)

    # Pad the feature dim to a full 128-lane vreg (lane-dense loads/stores).
    C_pad = max(LANE, ((C + LANE - 1) // LANE) * LANE)

    # Fill MXU rows: block several batch elements per grid step (target >= 256 rows),
    # while keeping the grid axis evenly divisible.
    if batch_block is None:
        batch_block = min(B, max(1, pl.cdiv(256, T)))
        while B % batch_block != 0:
            batch_block -= 1
    grid = (B // batch_block,)

    def pad_wt(w):
        # (out, in) -> (in, out), zero-pad both dims to C_pad.
        return jnp.pad(w.T, ((0, C_pad - C), (0, C_pad - C)))

    def pad_b(b):
        return jnp.pad(b, (0, C_pad - C))

    # Fuse projections, fold 1/sqrt(C) into Q, one 128-lane tile per projection.
    wqkv = jnp.concatenate([pad_wt(wq * scale), pad_wt(wk), pad_wt(wv)],
                           axis=1).astype(jnp.bfloat16)               # (C_pad, 3*C_pad)
    bqkv = jnp.concatenate([pad_b(bq * scale), pad_b(bk), pad_b(bv)]
                           ).reshape(1, 3 * C_pad).astype(jnp.float32)

    # bf16 MXU operands; feature padding columns are zero.
    x_pad = jnp.pad(x, ((0, 0), (0, 0), (0, C_pad - C))).astype(jnp.bfloat16)

    x_spec = pl.BlockSpec((batch_block, T, C_pad), lambda b: (b, 0, 0))
    out_spec = pl.BlockSpec((batch_block, T, C_pad), lambda b: (b, 0, 0))
    w_spec = pl.BlockSpec((C_pad, 3 * C_pad), lambda b: (0, 0))
    bias_spec = pl.BlockSpec((1, 3 * C_pad), lambda b: (0, 0))

    out_pad = pl.pallas_call(
        attention_kernel,
        out_shape=jax.ShapeDtypeStruct((B, T, C_pad), jnp.float32),
        grid=grid,
        in_specs=[x_spec, w_spec, bias_spec],
        out_specs=out_spec,
        compiler_params=pltpu.CompilerParams(
            dimension_semantics=("parallel",)),   # batch steps -> both v7x TCs
    )(x_pad, wqkv, bqkv)

    # Drop the lane padding outside the kernel.
    return out_pad[:, :, :C]


def attention_ref(x, wq, bq, wk, bk, wv, bv):
    """Pure-JAX f32 reference mirroring the PyTorch forward."""
    B, T, C = x.shape
    q = x @ wq.T + bq
    k = x @ wk.T + bk
    v = x @ wv.T + bv
    scores = jnp.einsum("btc,bsc->bts", q, k) / (C ** 0.5)
    mask = jnp.tril(jnp.ones((T, T)))
    scores = jnp.where(mask == 0, -jnp.inf, scores)
    w = jax.nn.softmax(scores, axis=-1)
    return jnp.einsum("bts,bsc->btc", w, v)


if __name__ == "__main__":
    layer_size = 32   # C
    block_size = 8    # max T (causal mask size)
    B, T, C = 2, block_size, layer_size

    key = jax.random.PRNGKey(0)
    kx, kq, kbq, kk, kbk, kv, kbv = jax.random.split(key, 7)

    bound = 1.0 / (C ** 0.5)   # deterministic PyTorch-Linear-style init
    x = jax.random.normal(kx, (B, T, C), dtype=jnp.float32)
    wq = jax.random.uniform(kq, (C, C), jnp.float32, -bound, bound)
    bq = jax.random.uniform(kbq, (C,), jnp.float32, -bound, bound)
    wk = jax.random.uniform(kk, (C, C), jnp.float32, -bound, bound)
    bk = jax.random.uniform(kbk, (C,), jnp.float32, -bound, bound)
    wv = jax.random.uniform(kv, (C, C), jnp.float32, -bound, bound)
    bv = jax.random.uniform(kbv, (C,), jnp.float32, -bound, bound)

    out = attention_pallas(x, wq, bq, wk, bk, wv, bv)
    jax.block_until_ready(out)

    ref = attention_ref(x, wq, bq, wk, bk, wv, bv)
    assert out.shape == (B, T, C)
    # Relaxed tolerance vs the f32 reference: bf16 MXU operands + approx reciprocal.
    assert jnp.allclose(out, ref, atol=3e-2, rtol=3e-2), "mismatch vs reference"

    print("KERNEL_OK")
</pallas_src>

<mosaic_0001>
module attributes {stable_mosaic.version = 11 : i64} {
  func.func @attention_kernel(%arg0: i32, %arg1: memref<2x8x128xbf16, #tpu.memory_space<vmem>>, %arg2: memref<128x384xbf16, #tpu.memory_space<vmem>>, %arg3: memref<1x384xf32, #tpu.memory_space<vmem>>, %arg4: memref<2x8x128xf32, #tpu.memory_space<vmem>>) attributes {dimension_semantics = [#tpu.dimension_semantics<parallel>], iteration_bounds = array<i64: 1>, scalar_prefetch = 0 : i64, scratch_operands = 0 : i64, tpu.core_type = #tpu.core_type<tc>, window_params = [{transform_indices = @transform_0, window_bounds = array<i64: 2, 8, 128>}, {pipeline_mode = #tpu.pipeline_mode<synchronous>, transform_indices = @transform_1, window_bounds = array<i64: 128, 384>}, {pipeline_mode = #tpu.pipeline_mode<synchronous>, transform_indices = @transform_2, window_bounds = array<i64: 1, 384>}, {transform_indices = @transform_3, window_bounds = array<i64: 2, 8, 128>}]} {
    %c0 = arith.constant 0 : index
    %c0_0 = arith.constant 0 : index
    %c0_1 = arith.constant 0 : index
    %0 = vector.load %arg1[%c0, %c0_0, %c0_1] : memref<2x8x128xbf16, #tpu.memory_space<vmem>>, vector<2x8x128xbf16>
    %1 = vector.shape_cast %0 : vector<2x8x128xbf16> to vector<16x128xbf16>
    %c0_2 = arith.constant 0 : index
    %c0_3 = arith.constant 0 : index
    %2 = vector.load %arg2[%c0_2, %c0_3] : memref<128x384xbf16, #tpu.memory_space<vmem>>, vector<128x384xbf16>
    %cst = arith.constant dense<0.000000e+00> : vector<16x384xf32>
    %3 = tpu.matmul %1, %2, %cst {dimension_numbers = #tpu.dot_dimension_numbers<[1], [0], [0], [1], [0, 0, 1, 1], [], []>} : vector<16x128xbf16>, vector<128x384xbf16>, vector<16x384xf32> -> vector<16x384xf32>
    %c0_4 = arith.constant 0 : index
    %c0_5 = arith.constant 0 : index
    %4 = vector.load %arg3[%c0_4, %c0_5] : memref<1x384xf32, #tpu.memory_space<vmem>>, vector<1x384xf32>
    %5 = vector.broadcast %4 : vector<1x384xf32> to vector<16x384xf32>
    %6 = arith.addf %3, %5 : vector<16x384xf32>
    %7 = vector.extract_strided_slice %6 {offsets = [0, 0], sizes = [16, 128], strides = [1, 1]} : vector<16x384xf32> to vector<16x128xf32>
    %8 = vector.shape_cast %7 : vector<16x128xf32> to vector<2x8x128xf32>
    %9 = arith.truncf %8 : vector<2x8x128xf32> to vector<2x8x128xbf16>
    %10 = vector.extract_strided_slice %6 {offsets = [0, 128], sizes = [16, 128], strides = [1, 1]} : vector<16x384xf32> to vector<16x128xf32>
    %11 = vector.shape_cast %10 : vector<16x128xf32> to vector<2x8x128xf32>
    %12 = arith.truncf %11 : vector<2x8x128xf32> to vector<2x8x128xbf16>
    %13 = vector.extract_strided_slice %6 {offsets = [0, 256], sizes = [16, 128], strides = [1, 1]} : vector<16x384xf32> to vector<16x128xf32>
    %14 = vector.shape_cast %13 : vector<16x128xf32> to vector<2x8x128xf32>
    %15 = arith.truncf %14 : vector<2x8x128xf32> to vector<2x8x128xbf16>
    "tpu.trace_start"() <{level = 10 : i32, message = "bqd,bkd->bqk"}> : () -> ()
    %cst_6 = arith.constant dense<0.000000e+00> : vector<2x8x8xf32>
    %16 = tpu.matmul %9, %12, %cst_6 {dimension_numbers = #tpu.dot_dimension_numbers<[2], [2], [1], [1], [0, 0, 0, 1, 1, 1], [0], [0]>} : vector<2x8x128xbf16>, vector<2x8x128xbf16>, vector<2x8x8xf32> -> vector<2x8x8xf32>
    "tpu.trace_stop"() : () -> ()
    %17 = tpu.iota {dimensions = array<i32: 0>} : vector<8x8xi32>
    %18 = tpu.iota {dimensions = array<i32: 1>} : vector<8x8xi32>
    %19 = arith.cmpi sle, %18, %17 : vector<8x8xi32>
    %20 = vector.shape_cast %19 : vector<8x8xi1> to vector<1x8x8xi1>
    %cst_7 = arith.constant -1.000000e+30 : f32
    %21 = vector.shape_cast %20 : vector<1x8x8xi1> to vector<1x8x8xi1>
    %22 = vector.broadcast %21 : vector<1x8x8xi1> to vector<2x8x8xi1>
    %23 = vector.broadcast %cst_7 : f32 to vector<2x8x8xf32>
    %24 = arith.select %22, %16, %23 : vector<2x8x8xi1>, vector<2x8x8xf32>
    %cst_8 = arith.constant dense<0xFF800000> : vector<2x8xf32>
    %25 = vector.multi_reduction <maximumf>, %24, %cst_8 [2] : vector<2x8x8xf32> to vector<2x8xf32>
    %26 = vector.shape_cast %25 : vector<2x8xf32> to vector<2x8x1xf32>
    %27 = vector.broadcast %26 : vector<2x8x1xf32> to vector<2x8x8xf32>
    %28 = arith.subf %24, %27 : vector<2x8x8xf32>
    %29 = math.exp %28 : vector<2x8x8xf32>
    %cst_9 = arith.constant dense<0.000000e+00> : vector<2x8xf32>
    %30 = vector.multi_reduction <add>, %29, %cst_9 [2] : vector<2x8x8xf32> to vector<2x8xf32>
    %31 = vector.shape_cast %30 : vector<2x8xf32> to vector<2x8x1xf32>
    %32 = tpu.reciprocal %31 {approx = true} : vector<2x8x1xf32> -> vector<2x8x1xf32>
    %33 = vector.broadcast %32 : vector<2x8x1xf32> to vector<2x8x8xf32>
    %34 = arith.mulf %29, %33 : vector<2x8x8xf32>
    %35 = arith.truncf %34 : vector<2x8x8xf32> to vector<2x8x8xbf16>
    "tpu.trace_start"() <{level = 10 : i32, message = "bqk,bkd->bqd"}> : () -> ()
    %cst_10 = arith.constant dense<0.000000e+00> : vector<2x8x128xf32>
    %36 = tpu.matmul %35, %15, %cst_10 {dimension_numbers = #tpu.dot_dimension_numbers<[2], [1], [1], [2], [0, 0, 0, 1, 1, 2], [0], [0]>} : vector<2x8x8xbf16>, vector<2x8x128xbf16>, vector<2x8x128xf32> -> vector<2x8x128xf32>
    "tpu.trace_stop"() : () -> ()
    %c0_11 = arith.constant 0 : index
    %c0_12 = arith.constant 0 : index
    %c0_13 = arith.constant 0 : index
    %37 = vector.load %arg4[%c0_11, %c0_12, %c0_13] : memref<2x8x128xf32, #tpu.memory_space<vmem>>, vector<2x8x128xf32>
    tpu.vector_store %arg4[%c0_11, %c0_12, %c0_13], %36 {strides = array<i32>} : memref<2x8x128xf32, #tpu.memory_space<vmem>>, vector<2x8x128xf32>,
    return
  }
  func.func @transform_0(%arg0: i32) -> (i32, i32, i32) {
    %c0_i32 = arith.constant 0 : i32
    %c0_i32_0 = arith.constant 0 : i32
    %c0_i32_1 = arith.constant 0 : i32
    return %arg0, %c0_i32, %c0_i32_0 : i32, i32, i32
  }
  func.func @transform_1(%arg0: i32) -> (i32, i32) {
    %c0_i32 = arith.constant 0 : i32
    %c0_i32_0 = arith.constant 0 : i32
    %c0_i32_1 = arith.constant 0 : i32
    return %c0_i32, %c0_i32_0 : i32, i32
  }
  func.func @transform_2(%arg0: i32) -> (i32, i32) {
    %c0_i32 = arith.constant 0 : i32
    %c0_i32_0 = arith.constant 0 : i32
    %c0_i32_1 = arith.constant 0 : i32
    return %c0_i32, %c0_i32_0 : i32, i32
  }
  func.func @transform_3(%arg0: i32) -> (i32, i32, i32) {
    %c0_i32 = arith.constant 0 : i32
    %c0_i32_0 = arith.constant 0 : i32
    %c0_i32_1 = arith.constant 0 : i32
    return %arg0, %c0_i32, %c0_i32_0 : i32, i32, i32
  }
}

</mosaic_0001>

<bundles_post_ra>
// kernel: tpu_custom_call.1
= control target key start
LH: loop header
LB: loop body
LE: loop exit
PB: predicated region body
PF: predicated region fallthrough
CT: control target
= control target key end

     0   :  { %8 = vsyncpa [#allocation3], 0  ;;  %s858_s0 = inlined_call_operand.hbm [shape: bf16[2,8,128], index: 0, kind: input, shape index: {}]   ;;  %s859_s1 = inlined_call_operand.hbm [shape: bf16[128,384], index: 1, kind: input, shape index: {}]   ;;  %s860_s2 = inlined_call_operand.vmem [shape: f32[1,384], index: 2, kind: input, shape index: {}]   ;;  %s861_s3 = inlined_call_operand.hbm [shape: f32[2,8,128], index: 3, kind: output, shape index: {}]  }
   0x1   :  { %9 = vsyncpa [#allocation6], 0 }
   0x2   :  { %10 = vsyncpa [#allocation4], 0  ;;  %s759_s12 = smov [#allocation2]   ;;  %s687_s16 = scalar_lea.hbm %s858_s0, 128 }
   0x3   :  { %s16_s13 = sshll.u32 %s759_s12, 4  ;;  %p688_p0 = scmp.ne.s32.totalorder %s858_s0, %s687_s16  ;;  %s17_s13 = int_to_ptr.vmem [resolvable:$true] %s16_s13 }
   0x4   :  { %p691_p1 = scmp.lt.u32.totalorder %s687_s16, %s858_s0 }
   0x6   :  { %p693_p2 = pnand %p691_p1, %p688_p0 }
   0x8   :  { %696 = shalt.err (!%p693_p2)
}
   0x9   :  { %s697_s21 = scalar_lea.vmem %s17_s13, 128  ;;  %p702_p4 = scmp.lt.s32.totalorder %s17_s13, %s17_s13 }
   0xa   :  { %p698_p3 = scmp.ne.s32.totalorder %s17_s13, %s697_s21  ;;  %p703_p5 = scmp.lt.s32.totalorder %s697_s21, %s697_s21 }
   0xc   :  { %p704_p6 = por %p703_p5, %p702_p4 }
   0xe   :  { %p705_p7 = pnand %p704_p6, %p698_p3 }
  0x10   :  { %708 = shalt.err (!%p705_p7)
}
  0x11   :  { %s760_s22 = smov 64   ;;  %s761_s23 = smov 4  }
  0x12   :  { %22 = dma.hbm_to_vmem [thread:$0]  %s858_s0, 128, %s17_s13, [#allocation3], %s760_s22, %s760_s22, %s761_s23  }
  0x13   :  { %s762_s26 = smov [#allocation5]   ;;  %s709_s30 = scalar_lea.hbm %s859_s1, 3072 }
  0x14   :  { %s28_s27 = sshll.u32 %s762_s26, 4  ;;  %p710_p8 = scmp.ne.s32.totalorder %s859_s1, %s709_s30  ;;  %s29_s27 = int_to_ptr.vmem [resolvable:$true] %s28_s27 }
  0x15   :  { %p713_p9 = scmp.lt.u32.totalorder %s709_s30, %s859_s1 }
  0x17   :  { %p715_p10 = pnand %p713_p9, %p710_p8 }
  0x19   :  { %718 = shalt.err (!%p715_p10)
}
  0x1a   :  { %s719_s8 = scalar_lea.vmem %s29_s27, 3072  ;;  %p724_p12 = scmp.lt.s32.totalorder %s29_s27, %s29_s27 }
  0x1b   :  { %p720_p11 = scmp.ne.s32.totalorder %s29_s27, %s719_s8  ;;  %p725_p13 = scmp.lt.s32.totalorder %s719_s8, %s719_s8 }
  0x1d   :  { %p726_p0 = por %p725_p13, %p724_p12 }
  0x1f   :  { %p727_p1 = pnand %p726_p0, %p720_p11 }
  0x21   :  { %730 = shalt.err (!%p727_p1)
}
  0x22   :  { %s763_s0 = smov 192   ;;  %s764_s9 = smov 12  }
  0x23   :  { %34 = dma.hbm_to_vmem [thread:$0]  %s859_s1, 3072, %s29_s27, [#allocation6], %s763_s0, %s763_s0, %s764_s9  }
  0x24   :  { %753 = dma.done.wait [#allocation3], 128  }
  0x25   :  { %754 = vsyncadd [#allocation3], 4294967168 }
  0x26   :  { %755 = dma.done.wait [#allocation6], 3072  }
  0x27   :  { %756 = vsyncadd [#allocation6], 4294964224  ;;  %v765_v0 = vmov 0   ;;  %v766_v1 = vmov 0.0   ;;  %v646_v2 = vld [vmem:[#allocation5 + $0x4] ss:$12 sps:$4 sm:$0xff]   ;;  %v80_v27 = vlaneseq }
  0x28   :  { %261 = vmatprep.mubr.bf16.mxu0 %v765_v0  ;;  %590 = vmatprep.subr.bf16.mxu1 %v766_v1  ;;  %v648_v3 = vld [vmem:[#allocation5] ss:$12 sps:$4 sm:$0xff]   ;;  %v649_v4 = vld [vmem:[#allocation5 + $0x1c] ss:$12 sps:$4 sm:$0xff]   ;;  %v651_v5 = vld [vmem:[#allocation5 + $0x18] ss:$12 sps:$4 sm:$0xff]  }
  0x29   :  { %229 = vmatprep.subr.bf16.mxu0 %v646_v2  ;;  %v652_v6 = vld [vmem:[#allocation5 + $0x34] ss:$12 sps:$4 sm:$0xff]   ;;  %v654_v7 = vld [vmem:[#allocation5 + $0x30] ss:$12 sps:$4 sm:$0xff]   ;;  %v655_v8 = vld [vmem:[#allocation5 + $0x4c] ss:$12 sps:$4 sm:$0xff]  }
  0x2a   :  { %230 = vmatpush1.bf16.msra.mxu0 %v648_v3  ;;  %v657_v9 = vld [vmem:[#allocation5 + $0x48] ss:$12 sps:$4 sm:$0xff]   ;;  %v658_v10 = vld [vmem:[#allocation5 + $0x64] ss:$12 sps:$4 sm:$0xff]   ;;  %v672_v12 = vld [vmem:[#allocation5 + $0x20] ss:$12 sps:$4 sm:$0xff]  }
  0x2b   :  { %231 = vmatprep.subr.bf16.mxu0 %v649_v4  ;;  %v671_v11 = vld [vmem:[#allocation5 + $0x8] ss:$12 sps:$4 sm:$0xff]   ;;  %v660_v13 = vld [vmem:[#allocation5 + $0x60] ss:$12 sps:$4 sm:$0xff]   ;;  %v673_v15 = vld [vmem:[#allocation5 + $0x38] ss:$12 sps:$4 sm:$0xff]  }
  0x2c   :  { %591 = vmatpush3.bf16.msra.mxu1 %v671_v11  ;;  %v661_v14 = vld [vmem:[#allocation5 + $0x7c] ss:$12 sps:$4 sm:$0xff]   ;;  %v663_v16 = vld [vmem:[#allocation5 + $0x78] ss:$12 sps:$4 sm:$0xff]   ;;  %v664_v17 = vld [vmem:[#allocation5 + $0x94] ss:$12 sps:$4 sm:$0xff]  }
  0x2d   :  { %592 = vmatprep.subr.bf16.mxu1 %v766_v1  ;;  %v674_v18 = vld [vmem:[#allocation5 + $0x50] ss:$12 sps:$4 sm:$0xff]   ;;  %v667_v20 = vld [vmem:[#allocation5 + $0xac] ss:$12 sps:$4 sm:$0xff]   ;;  %v675_v21 = vld [vmem:[#allocation5 + $0x68] ss:$12 sps:$4 sm:$0xff]  }
  0x2e   :  { %232 = vmatpush1.bf16.msra.mxu0 %v651_v5  ;;  %v666_v19 = vld [vmem:[#allocation5 + $0x90] ss:$12 sps:$4 sm:$0xff]   ;;  %v669_v22 = vld [vmem:[#allocation5 + $0xa8] ss:$12 sps:$4 sm:$0xff]   ;;  %v676_v24 = vld [vmem:[#allocation5 + $0x80] ss:$12 sps:$4 sm:$0xff]  }
  0x2f   :  { %233 = vmatprep.subr.bf16.mxu0 %v652_v6  ;;  %v670_v23 = vld [vmem:[#allocation2] sm:$0xff]   ;;  %vm767_vm0 = vmmov 0   ;;  %v81_v28 = vshrl.u32 %v80_v27, 7  ;;  %vm436_vm1 = vcmask 1043456   ;;  %v402_v58 = vand.u32 127, %v80_v27 }
  0x30   :  { %593 = vmatpush3.bf16.msra.mxu1 %v672_v12  ;;  %v677_v25 = vld [vmem:[#allocation5 + $0x98] ss:$12 sps:$4 sm:$0xff]   ;;  %v678_v26 = vld [vmem:[#allocation5 + $0xb0] ss:$12 sps:$4 sm:$0xff]   ;;  %606 = vmatprep.mubr.msk.bf16.mxu1 %vm767_vm0, %v766_v1  ;;  %vm408_vm3 = vcmask 64512  }
  0x31   :  { %594 = vmatprep.subr.bf16.mxu1 %v766_v1  ;;  %v86_v29 = vsub.s32 1, %v81_v28  ;;  %v78_v30 = vld [vmem:[%s860_s2] sm:$0x7]  ;;  %v82_v32 = vsub.s32 0, %v81_v28  ;;  %v90_v46 = vsub.s32 2, %v81_v28  ;;  %vm403_vm2 = vcmp.le.s32.totalorder %v402_v58, %v81_v28  ;;  %s768_s2 = smov [#allocation7]  }
  0x32   :  { %234 = vmatpush1.bf16.msra.mxu0 %v654_v7  ;;  %s533_s13 = sshll.u32 %s768_s2, 4  ;;  %s534_s13 = int_to_ptr.vmem [resolvable:$true] %s533_s13 }
  0x33   :  { %235 = vmatprep.subr.bf16.mxu0 %v655_v8  ;;  %v87_v31 = vrot.slane %v78_v30, %v86_v29  ;;  %v83_v37 = vrot.slane %v78_v30, %v82_v32  ;;  %v91_v47 = vrot.slane %v78_v30, %v90_v46  ;;  %s731_s14 = scalar_lea.vmem %s534_s13, 256  ;;  %p736_p3 = scmp.lt.s32.totalorder %s534_s13, %s534_s13 }
  0x34   :  { %595 = vmatpush3.bf16.msra.mxu1 %v673_v15  ;;  %p732_p2 = scmp.ne.s32.totalorder %s534_s13, %s731_s14  ;;  %p737_p4 = scmp.lt.s32.totalorder %s731_s14, %s731_s14 }
  0x35   :  { %596 = vmatprep.subr.bf16.mxu1 %v766_v1 }
  0x36   :  { %236 = vmatpush1.bf16.msra.mxu0 %v657_v9  ;;  %p738_p5 = por %p737_p4, %p736_p3 }
  0x37   :  { %237 = vmatprep.subr.bf16.mxu0 %v658_v10 }
  0x38   :  { %597 = vmatpush3.bf16.msra.mxu1 %v674_v18  ;;  %p739_p6 = pnand %p738_p5, %p732_p2 }
  0x39   :  { %598 = vmatprep.subr.bf16.mxu1 %v766_v1 }
  0x3a   :  { %238 = vmatpush1.bf16.msra.mxu0 %v660_v13 }
  0x3b   :  { %239 = vmatprep.subr.bf16.mxu0 %v661_v14 }
  0x3c   :  { %599 = vmatpush3.bf16.msra.mxu1 %v675_v21 }
  0x3d   :  { %600 = vmatprep.subr.bf16.mxu1 %v766_v1 }
  0x3e   :  { %240 = vmatpush1.bf16.msra.mxu0 %v663_v16 }
  0x3f   :  { %241 = vmatprep.subr.bf16.mxu0 %v664_v17 }
  0x40   :  { %601 = vmatpush3.bf16.msra.mxu1 %v676_v24 }
  0x41   :  { %602 = vmatprep.subr.bf16.mxu1 %v766_v1 }
  0x42   :  { %242 = vmatpush1.bf16.msra.mxu0 %v666_v19 }
  0x43   :  { %243 = vmatprep.subr.bf16.mxu0 %v667_v20 }
  0x44   :  { %603 = vmatpush3.bf16.msra.mxu1 %v677_v25 }
  0x45   :  { %604 = vmatprep.subr.bf16.mxu1 %v766_v1 }
  0x46   :  { %244 = vmatpush1.bf16.msra.mxu0 %v669_v22 }
  0x47   :  { %610 = vmatprep.subr.bf16.mxu0 %v766_v1 }
  0x48   :  { %605 = vmatpush3.bf16.msra.mxu1 %v678_v26 }
  0x49   :  { %262 = vmatmul.mubr.bf16.vlgmr.msra.gmra.mrb[0].mxu0 %v670_v23  ;;  %616 = vmatprep.subr.bf16.mxu1 %v766_v1 }
  0x4a   :  { %612 = vmatprep.mubr.msk.bf16.mxu0 %vm767_vm0, %v766_v1 }
  0x4b   :  { %607 = vmatmul.mubr.bf16.vlgmr.msra.gmra.mrb[0].mxu1 %v670_v23 }
  0x4c   :  { %618 = vmatprep.mubr.msk.bf16.mxu1 %vm767_vm0, %v766_v1 }
 0x11c   :  { %v263_v33 = vpop.f32.mrb[0].mxu0 }
 0x11d   :  { %v265_v34 = vpop.f32.mrb[1].mxu0  ;;  %v264_v42 = vadd.f32 %v263_v33, %v83_v37 }
 0x11e   :  { %v266_v35 = vadd.f32 %v265_v34, %v87_v31  ;;  %v267_v36 = vpop.f32.mrb[2].mxu0  ;;  %v306_v48 = vpop.f32.mrb[0].mxu1 }
 0x11f   :  { %v269_v38 = vpop.f32.mrb[3].mxu0  ;;  %v268_v43 = vadd.f32 %v267_v36, %v83_v37  ;;  %v313_v44 = vpack.c.bf16 %v264_v42, %v264_v42  ;;  %v307_v49 = vadd.f32 %v306_v48, %v91_v47  ;;  %v608_v50 = vpop.f32.mrb[1].mxu1 }
 0x120   :  { %v315_v39 = vpack.c.bf16 %v266_v35, %v266_v35  ;;  %v270_v40 = vadd.f32 %v269_v38, %v87_v31  ;;  %v309_v51 = vpop.f32.mrb[2].mxu1 }
 0x121   :  { %v314_v45 = vpack.c.bf16 %v268_v43, %v268_v43  ;;  %v317_v52 = vpack.c.bf16 %v307_v49, %v307_v49  ;;  %v310_v53 = vadd.f32 %v309_v51, %v91_v47  ;;  %v609_v54 = vpop.f32.mrb[3].mxu1 }
 0x122   :  { %v316_v41 = vpack.c.bf16 %v270_v40, %v270_v40  ;;  %611 = vmatpush3.bf16.xpose.msra.mxu0 %v315_v39 }
 0x123   :  { %622 = vmatprep.subr.bf16.mxu0 %v766_v1  ;;  %v438_v55 = vsel %vm436_vm1, %v317_v52, 0  ;;  %v318_v56 = vpack.c.bf16 %v310_v53, %v310_v53 }
 0x124   :  { %617 = vmatpush3.bf16.xpose.msra.mxu1 %v316_v41 }
 0x125   :  { %628 = vmatprep.subr.bf16.mxu1 %v766_v1  ;;  %v484_v57 = vsel %vm436_vm1, %v318_v56, 0 }
 0x129   :  { %613 = vmatmul.mubr.bf16.vlgmr.msra.gmra.mrb[4].mxu0 %v313_v44 }
 0x12a   :  { %624 = vmatprep.mubr.msk.bf16.mxu0 %vm767_vm0, %v766_v1  ;;  %623 = vmatpush3.bf16.msra.mxu0 %v438_v55 }
 0x12b   :  { %619 = vmatmul.mubr.bf16.vlgmr.msra.gmra.mrb[4].mxu1 %v314_v45 }
 0x12c   :  { %630 = vmatprep.mubr.msk.bf16.mxu1 %vm767_vm0, %v766_v1  ;;  %629 = vmatpush3.bf16.msra.mxu1 %v484_v57 }
 0x1fc   :  { %v353_v59 = vpop.f32.mrb[4].mxu0 }
 0x1fd   :  { %v406_v60 = vsel %vm403_vm2, %v353_v59, -1e+30  ;;  %v614_v61 = vpop.f32.mrb[5].mxu0 }
 0x1fe   :  { %v356_v62 = vpop.f32.mrb[6].mxu0  ;;  %v393_v63 = vpop.f32.mrb[4].mxu1  ;;  %v409_v0 = vsel %vm408_vm3, %v406_v60, -inf }
 0x1ff   :  { %v407_v1 = vsel %vm403_vm2, %v393_v63, -1e+30  ;;  %v620_v2 = vpop.f32.mrb[5].mxu1  ;;  %410 = vmax.xlane.f32.xlu0 %v409_v0  ;;  %v615_v3 = vpop.f32.mrb[7].mxu0 }
 0x200   :  { %v396_v4 = vpop.f32.mrb[6].mxu1  ;;  %v412_v6 = vsel %vm408_vm3, %v407_v1, -inf }
 0x201   :  { %v621_v5 = vpop.f32.mrb[7].mxu1 }
 0x203   :  { %413 = vmax.xlane.f32.xlu0 %v412_v6 }
 0x28c   :  { %v411_v7 = vpop.xlane.xlu0 %410 }
 0x28d   :  { %v415_v8 = vsub.f32 %v406_v60, %v411_v7 }
 0x28f   :  { %v417_v9 = vmul.f32 1.442695, %v415_v8 }
 0x290   :  { %v414_v10 = vpop.xlane.xlu0 %413 }
 0x291   :  { %679 = vpow2.f32 %v417_v9  ;;  %v416_v11 = vsub.f32 %v407_v1, %v414_v10 }
 0x293   :  { %v419_v12 = vmul.f32 1.442695, %v416_v11 }
 0x295   :  { %681 = vpow2.f32 %v419_v12 }
 0x29b   :  { %v680_v13 = vpop.eup %679 }
 0x29c   :  { %v421_v14 = vsel %vm408_vm3, %v680_v13, 0.0 }
 0x29d   :  { %422 = vadd.xlane.f32.xlu1 %v421_v14 }
 0x29f   :  { %v682_v15 = vpop.eup %681 }
 0x2a0   :  { %v424_v16 = vsel %vm408_vm3, %v682_v15, 0.0 }
 0x2a1   :  { %425 = vadd.xlane.f32.xlu1 %v424_v16 }
 0x32a   :  { %v423_v17 = vpop.xlane.xlu1 %422 }
 0x32b   :  { %683 = vrcp.f32 %v423_v17 }
 0x32e   :  { %v426_v18 = vpop.xlane.xlu1 %425 }
 0x32f   :  { %685 = vrcp.f32 %v426_v18 }
 0x335   :  { %v684_v19 = vpop.eup %683 }
 0x336   :  { %v429_v20 = vmul.f32 %v684_v19, %v680_v13 }
 0x338   :  { %v431_v21 = vpack.c.bf16 %v429_v20, %v429_v20 }
 0x339   :  { %v686_v22 = vpop.eup %685 }
 0x33a   :  { %v430_v23 = vmul.f32 %v686_v22, %v682_v15  ;;  %625 = vmatmul.mubr.msk.bf16.vlgmr.msra.gmra.mrb[8].mxu0 %vm408_vm3, %v431_v21 }
 0x33c   :  { %v432_v24 = vpack.c.bf16 %v430_v23, %v430_v23 }
 0x33e   :  { %631 = vmatmul.mubr.msk.bf16.vlgmr.msra.gmra.mrb[8].mxu1 %vm408_vm3, %v432_v24 }
 0x40d   :  { %v474_v25 = vpop.f32.mrb[8].mxu0 }
 0x40e   :  { %526 = vst [vmem:[#allocation7] sm:$0xff] %v474_v25  ;;  %v626_v26 = vpop.f32.mrb[9].mxu0 }
 0x40f   :  { %v477_v27 = vpop.f32.mrb[10].mxu0 }
 0x410   :  { %v627_v28 = vpop.f32.mrb[11].mxu0 }
 0x411   :  { %v520_v29 = vpop.f32.mrb[8].mxu1 }
 0x412   :  { %527 = vst [vmem:[#allocation7 + $0x8] sm:$0xff] %v520_v29  ;;  %v632_v30 = vpop.f32.mrb[9].mxu1 }
 0x413   :  { %v523_v31 = vpop.f32.mrb[10].mxu1 }
 0x414   :  { %742 = shalt.err (!%p739_p6)
}
 0x415   :  { %s743_s17 = scalar_lea.hbm %s861_s3, 256 }
 0x416   :  { %p744_p7 = scmp.ne.s32.totalorder %s861_s3, %s743_s17  ;;  %p747_p8 = scmp.lt.u32.totalorder %s743_s17, %s861_s3 }
 0x418   :  { %p749_p9 = pnand %p747_p8, %p744_p7 }
 0x41a   :  { %752 = shalt.err (!%p749_p9)
}
 0x41b   :  { %s769_s22 = smov 128   ;;  %s770_s23 = smov 8   ;;  %v633_v32 = vpop.f32.mrb[11].mxu1 }
 0x41c   :  { %539 = dma.vmem_to_hbm [thread:$0]  %s534_s13, 256, %s861_s3, [#allocation4], %s769_s22, %s769_s22, %s770_s23  }
 0x41d   :  { %757 = dma.done.wait [#allocation4], 256  }
 0x41e   :  { %758 = vsyncadd [#allocation4], 4294967040 }
 0x41f   :  { %543 = vsyncpa [#allocation3], 1 }
 0x420   :  { %544 = vsyncpa [#allocation6], 1 }
 0x421   :  { %545 = vsyncpa [#allocation4], 1 }

</bundles_post_ra>
